<compile_context>
chip_gen: v6e
topology: v6e:2x2x1
jax: 0.10.0
libtpu: 0.0.40
codegen_flags: <defaults>
</compile_context>

<pallas_src>
import functools
import math

import jax
import jax.numpy as jnp
import numpy as np
from jax.experimental import pallas as pl
from jax.experimental.pallas import tpu as pltpu

TWO_PI = 2.0 * math.pi


def _fourier_kernel(x_ref, wt_ref, o_ref, *, dhalf):
    # x_ref:  (tb, din)
    # wt_ref: (din, dhalf)   -- already scaled by 2*pi, already transposed
    # o_ref:  (tb, 2*dhalf)  -- [:, :dhalf]=cos, [:, dhalf:]=sin
    x = x_ref[...]
    wt = wt_ref[...]
    # MXU matmul with f32 accumulation.  HIGHEST precision keeps f32 operands
    # at full precision (default TPU matmul precision drops them to bf16,
    # which is fatal for cos/sin of an O(10) argument).
    f = jnp.dot(x, wt, preferred_element_type=jnp.float32,
                precision=jax.lax.Precision.HIGHEST)
    # Direct slice stores into the two output halves (no (tb, 2*dhalf) temp).
    o_ref[:, :dhalf] = jnp.cos(f).astype(o_ref.dtype)
    o_ref[:, dhalf:] = jnp.sin(f).astype(o_ref.dtype)


def fourier_features(x, weight, *, block_rows=None, out_dtype=None,
                     vmem_budget_bytes=16 * 1024 * 1024):
    """x: [B, in_features], weight: [out_features//2, in_features]
    -> [B, out_features] with [:, :half]=cos, [:, half:]=sin (matches torch.cat)."""
    B, din = x.shape
    dhalf, din_w = weight.shape
    assert din == din_w
    dout = 2 * dhalf
    if out_dtype is None:
        out_dtype = x.dtype
    out_itemsize = jnp.dtype(out_dtype).itemsize

    # Fold the 2*pi constant into the weight buffer and pre-transpose once.
    # Constant-buffer work (module-init equivalent), not per-call prescaling
    # of the streamed activation.
    wt = (TWO_PI * weight.astype(jnp.float32)).T.astype(x.dtype)   # (din, dhalf)

    # Auto-size the row tile: largest multiple of 8 (f32 sublanes) that keeps
    # double-buffered x + out tiles plus the resident weight under a
    # conservative VMEM budget (safe on v5e scoped default and v7x's 64 MiB),
    # capped at 512 (near the HBM-roofline sweet spot) and at the padded batch
    # so small batches are not padded wastefully.
    b_ceil8 = ((B + 7) // 8) * 8
    if block_rows is None:
        w_bytes = din * dhalf * 4
        per_row_bytes = 2 * din * x.dtype.itemsize + 2 * dout * out_itemsize
        tb = max(8, (vmem_budget_bytes - w_bytes) // max(per_row_bytes, 1))
        tb = min(int(tb), 512, b_ceil8)
        block_rows = max(8, (tb // 8) * 8)
    assert block_rows % 8 == 0, "row tile must be a multiple of 8 for f32 sublanes"

    # Pad rows so the batch is a multiple of the tile (handles any B, incl. B < 8).
    B_pad = ((B + block_rows - 1) // block_rows) * block_rows
    x_in = x if B_pad == B else jnp.pad(x, ((0, B_pad - B), (0, 0)))

    grid = (B_pad // block_rows,)

    # NOTE: pick out_features so that out_features // 2 is a multiple of 128
    # for fully lane-dense, unmasked output stores.
    out = pl.pallas_call(
        functools.partial(_fourier_kernel, dhalf=dhalf),
        out_shape=jax.ShapeDtypeStruct((B_pad, dout), out_dtype),
        grid_spec=pltpu.PrefetchScalarGridSpec(
            num_scalar_prefetch=0,
            grid=grid,
            in_specs=[
                pl.BlockSpec((block_rows, din), lambda i: (i, 0)),
                pl.BlockSpec((din, dhalf), lambda i: (0, 0)),   # resident weight
            ],
            out_specs=pl.BlockSpec((block_rows, dout), lambda i: (i, 0)),
        ),
        compiler_params=pltpu.CompilerParams(
            dimension_semantics=("parallel",),
            vmem_limit_bytes=32 * 1024 * 1024,
        ),
    )(x_in, wt)

    return out[:B] if B_pad != B else out


if __name__ == "__main__":
    key = jax.random.PRNGKey(0)
    kx, kw = jax.random.split(key)

    batch = 8
    in_features = 16
    out_features = 256   # even; out_features//2 = 128 -> lane-dense output halves
    std = 1.0

    # Deterministic "buffer" init mirroring torch.randn(...) * std.
    weight = jax.random.normal(kw, (out_features // 2, in_features), dtype=jnp.float32) * std
    x = jax.random.normal(kx, (batch, in_features), dtype=jnp.float32)

    out = jax.block_until_ready(fourier_features(x, weight))

    # Pure float64 numpy reference (independent of TPU matmul precision).
    xn = np.asarray(x, dtype=np.float64)
    wn = np.asarray(weight, dtype=np.float64)
    f_ref = 2.0 * np.pi * (xn @ wn.T)
    ref = np.concatenate([np.cos(f_ref), np.sin(f_ref)], axis=-1)

    assert out.shape == (batch, out_features)
    assert np.allclose(np.asarray(out, dtype=np.float64), ref, atol=1e-4, rtol=1e-4)

    print("KERNEL_OK")
</pallas_src>

<mosaic_0001>
module attributes {stable_mosaic.version = 11 : i64} {
  func.func @_fourier_kernel(%arg0: i32, %arg1: memref<8x16xf32, #tpu.memory_space<vmem>>, %arg2: memref<16x128xf32, #tpu.memory_space<vmem>>, %arg3: memref<8x256xf32, #tpu.memory_space<vmem>>) attributes {dimension_semantics = [#tpu.dimension_semantics<parallel>], iteration_bounds = array<i64: 1>, scalar_prefetch = 0 : i64, scratch_operands = 0 : i64, tpu.core_type = #tpu.core_type<tc>, window_params = [{transform_indices = @transform_0, window_bounds = array<i64: 8, 16>}, {pipeline_mode = #tpu.pipeline_mode<synchronous>, transform_indices = @transform_1, window_bounds = array<i64: 16, 128>}, {transform_indices = @transform_2, window_bounds = array<i64: 8, 256>}]} {
    %c0 = arith.constant 0 : index
    %c0_0 = arith.constant 0 : index
    %0 = vector.load %arg1[%c0, %c0_0] : memref<8x16xf32, #tpu.memory_space<vmem>>, vector<8x16xf32>
    %c0_1 = arith.constant 0 : index
    %c0_2 = arith.constant 0 : index
    %1 = vector.load %arg2[%c0_1, %c0_2] : memref<16x128xf32, #tpu.memory_space<vmem>>, vector<16x128xf32>
    %cst = arith.constant dense<0.000000e+00> : vector<8x128xf32>
    %2 = tpu.matmul %0, %1, %cst {dimension_numbers = #tpu.dot_dimension_numbers<[1], [0], [0], [1], [0, 0, 1, 1], [], []>, precision = #tpu.contract_precision<fp32>} : vector<8x16xf32>, vector<16x128xf32>, vector<8x128xf32> -> vector<8x128xf32>
    %3 = math.cos %2 : vector<8x128xf32>
    %c0_3 = arith.constant 0 : index
    %c0_4 = arith.constant 0 : index
    %4 = vector.load %arg3[%c0_3, %c0_4] : memref<8x256xf32, #tpu.memory_space<vmem>>, vector<8x128xf32>
    tpu.vector_store %arg3[%c0_3, %c0_4], %3 {strides = array<i32>} : memref<8x256xf32, #tpu.memory_space<vmem>>, vector<8x128xf32>,
    %5 = math.sin %2 : vector<8x128xf32>
    %c0_5 = arith.constant 0 : index
    %c128 = arith.constant 128 : index
    %6 = vector.load %arg3[%c0_5, %c128] : memref<8x256xf32, #tpu.memory_space<vmem>>, vector<8x128xf32>
    tpu.vector_store %arg3[%c0_5, %c128], %5 {strides = array<i32>} : memref<8x256xf32, #tpu.memory_space<vmem>>, vector<8x128xf32>,
    return
  }
  func.func @transform_0(%arg0: i32) -> (i32, i32) {
    %c0_i32 = arith.constant 0 : i32
    %c0_i32_0 = arith.constant 0 : i32
    return %arg0, %c0_i32 : i32, i32
  }
  func.func @transform_1(%arg0: i32) -> (i32, i32) {
    %c0_i32 = arith.constant 0 : i32
    %c0_i32_0 = arith.constant 0 : i32
    %c0_i32_1 = arith.constant 0 : i32
    return %c0_i32, %c0_i32_0 : i32, i32
  }
  func.func @transform_2(%arg0: i32) -> (i32, i32) {
    %c0_i32 = arith.constant 0 : i32
    %c0_i32_0 = arith.constant 0 : i32
    return %arg0, %c0_i32 : i32, i32
  }
}

</mosaic_0001>

<bundles_post_ra>
// kernel: tpu_custom_call.1
= control target key start
LH: loop header
LB: loop body
LE: loop exit
PB: predicated region body
PF: predicated region fallthrough
CT: control target
= control target key end

     0   :  { %7 = vsyncpa [#allocation3], 0  ;;  %s948_s0 = inlined_call_operand.hbm [shape: f32[8,16], index: 0, kind: input, shape index: {}]   ;;  %s949_s1 = inlined_call_operand.hbm [shape: f32[16,128], index: 1, kind: input, shape index: {}]   ;;  %s950_s2 = inlined_call_operand.hbm [shape: f32[8,256], index: 2, kind: output, shape index: {}]  }
   0x1   :  { %8 = vsyncpa [#allocation6], 0 }
   0x2   :  { %9 = vsyncpa [#allocation4], 0  ;;  %s884_s9 = smov [#allocation2]   ;;  %s885_s11 = smov [#allocation5]  }
   0x3   :  { %s16_s10 = sshll.u32 %s884_s9, 4  ;;  %s25_s12 = sshll.u32 %s885_s11, 4  ;;  %s17_s10 = int_to_ptr.vmem [resolvable:$true] %s16_s10  ;;  %s26_s12 = int_to_ptr.vmem [resolvable:$true] %s25_s12 }
   0x4   :  { %s826_s13 = scalar_lea.vmem %s17_s10, 128  ;;  %p831_p1 = scmp.lt.s32.totalorder %s17_s10, %s17_s10 }
   0x5   :  { %p827_p0 = scmp.ne.s32.totalorder %s17_s10, %s826_s13  ;;  %p832_p2 = scmp.lt.s32.totalorder %s826_s13, %s826_s13 }
   0x7   :  { %p833_p3 = por %p832_p2, %p831_p1 }
   0x9   :  { %p834_p4 = pnand %p833_p3, %p827_p0 }
   0xb   :  { %837 = shalt.err (!%p834_p4)
}
   0xc   :  { %19 = dma.hbm_to_vmem [thread:$0]  %s948_s0, 128, %s17_s10, [#allocation3]  }
   0xd   :  { %s846_s16 = scalar_lea.vmem %s26_s12, 256  ;;  %p851_p6 = scmp.lt.s32.totalorder %s26_s12, %s26_s12 }
   0xe   :  { %p847_p5 = scmp.ne.s32.totalorder %s26_s12, %s846_s16  ;;  %p852_p7 = scmp.lt.s32.totalorder %s846_s16, %s846_s16 }
  0x10   :  { %p853_p8 = por %p852_p7, %p851_p6 }
  0x12   :  { %p854_p9 = pnand %p853_p8, %p847_p5 }
  0x14   :  { %857 = shalt.err (!%p854_p9)
}
  0x15   :  { %s886_s17 = smov 128   ;;  %s887_s18 = smov 8  }
  0x16   :  { %31 = dma.hbm_to_vmem [thread:$0]  %s949_s1, 256, %s26_s12, [#allocation6], %s886_s17, %s886_s17, %s887_s18  }
  0x17   :  { %878 = dma.done.wait [#allocation3], 128  }
  0x18   :  { %879 = vsyncadd [#allocation3], 4294967168 }
  0x19   :  { %880 = dma.done.wait [#allocation6], 256  }
  0x1a   :  { %881 = vsyncadd [#allocation6], 4294967040  ;;  %v888_v0 = vmov 0.0   ;;  %vm889_vm0 = vmmov 0   ;;  %vm41_vm1 = vcmask 130048   ;;  %v40_v1 = vld [vmem:[#allocation5 + $0x8] sm:$0xff] }
  0x1b   :  { %755 = vmatprep.subr.mxu0 %v888_v0  ;;  %762 = vmatprep.subr.mxu1 %v888_v0  ;;  %v39_v2 = vld [vmem:[#allocation5] sm:$0xff]  ;;  %v38_v3 = vld [vmem:[#allocation2] sm:$0xff]  ;;  %v74_v4 = vand.u32 4294901760, %v40_v1  ;;  %v890_v47 = vmov 683565275   ;;  %s896_s0 = smov [#allocation7]  }
  0x1c   :  { %759 = vmatprep.mubr.msk.f32.mxu0 %vm889_vm0, %v888_v0  ;;  %766 = vmatprep.mubr.msk.f32.mxu1 %vm889_vm0, %v888_v0  ;;  %v77_v5 = vand.u32 4294901760, %v39_v2  ;;  %v43_v6 = vsel %vm41_vm1, %v38_v3, 0  ;;  %v891_v49 = vmov 2475754826   ;;  %v892_v52 = vmov 2131351028  }
  0x1d   :  { %v112_v7 = vand.u32 4294901760, %v43_v6  ;;  %756 = vmatpush3.msra.mxu0 %v74_v4  ;;  %v152_v8 = vsub.f32 %v40_v1, %v74_v4  ;;  %v893_v55 = vmov 2102212464   ;;  %v894_v58 = vmov 920167782   ;;  %s719_s1 = sshll.u32 %s896_s0, 4  ;;  %s720_s1 = int_to_ptr.vmem [resolvable:$true] %s719_s1 }
  0x1e   :  { %v159_v9 = vsub.f32 %v39_v2, %v77_v5  ;;  %757 = vmatprep.subr.mxu0 %v888_v0  ;;  %v895_v61 = vmov 1326507024   ;;  %s858_s21 = scalar_lea.vmem %s720_s1, 256  ;;  %p863_p11 = scmp.lt.s32.totalorder %s720_s1, %s720_s1 }
  0x1f   :  { %v113_v10 = vsub.f32 %v43_v6, %v112_v7  ;;  %758 = vmatpush3.msra.mxu0 %v77_v5  ;;  %v153_v11 = vand.u32 4294901760, %v152_v8  ;;  %p859_p10 = scmp.ne.s32.totalorder %s720_s1, %s858_s21  ;;  %p864_p12 = scmp.lt.s32.totalorder %s858_s21, %s858_s21 }
  0x20   :  { %v160_v12 = vand.u32 4294901760, %v159_v9  ;;  %769 = vmatprep.subr.mxu0 %v888_v0 }
  0x21   :  { %v114_v13 = vand.u32 4294901760, %v113_v10  ;;  %v154_v14 = vsub.f32 %v152_v8, %v153_v11  ;;  %p865_p13 = por %p864_p12, %p863_p11 }
  0x22   :  { %v161_v15 = vsub.f32 %v159_v9, %v160_v12 }
  0x23   :  { %v115_v16 = vsub.f32 %v113_v10, %v114_v13  ;;  %v155_v17 = vand.u32 4294901760, %v154_v14  ;;  %p866_p0 = pnand %p865_p13, %p859_p10 }
  0x24   :  { %v162_v18 = vand.u32 4294901760, %v161_v15 }
  0x25   :  { %v116_v19 = vand.u32 4294901760, %v115_v16  ;;  %763 = vmatpush3.msra.mxu1 %v155_v17 }
  0x26   :  { %764 = vmatprep.subr.mxu1 %v888_v0 }
  0x27   :  { %760 = vmatmul.mubr.f32.vlgmr.msra.gmra.mxu0 %v116_v19  ;;  %765 = vmatpush3.msra.mxu1 %v162_v18 }
  0x28   :  { %770 = vmatpush3.msra.mxu0 %v152_v8  ;;  %767 = vmatmul.mubr.f32.vlgmr.msra.gmra.mxu1 %v112_v7 }
  0x29   :  { %771 = vmatprep.subr.mxu0 %v888_v0  ;;  %776 = vmatprep.subr.mxu1 %v888_v0 }
  0x2a   :  { %772 = vmatpush3.msra.mxu0 %v159_v9  ;;  %773 = vmatprep.mubr.msk.f32.mxu0 %vm889_vm0, %v888_v0 }
  0x2b   :  { %777 = vmatpush3.msra.mxu1 %v74_v4  ;;  %774 = vmatmul.mubr.f32.vlgmr.msra.gmra.mxu0 %v113_v10 }
  0x2c   :  { %778 = vmatprep.subr.mxu1 %v888_v0  ;;  %783 = vmatprep.subr.mxu0 %v888_v0 }
  0x2d   :  { %779 = vmatpush3.msra.mxu1 %v77_v5  ;;  %780 = vmatprep.mubr.msk.f32.mxu1 %vm889_vm0, %v888_v0 }
  0x2e   :  { %784 = vmatpush3.msra.mxu0 %v153_v11  ;;  %781 = vmatmul.mubr.f32.vlgmr.msra.gmra.mxu1 %v114_v13 }
  0x2f   :  { %785 = vmatprep.subr.mxu0 %v888_v0  ;;  %790 = vmatprep.subr.mxu1 %v888_v0 }
  0x30   :  { %786 = vmatpush3.msra.mxu0 %v160_v12  ;;  %787 = vmatprep.mubr.msk.f32.mxu0 %vm889_vm0, %v888_v0 }
  0x31   :  { %791 = vmatpush3.msra.mxu1 %v74_v4  ;;  %788 = vmatmul.mubr.f32.vlgmr.msra.gmra.mxu0 %v112_v7 }
  0x32   :  { %792 = vmatprep.subr.mxu1 %v888_v0  ;;  %794 = vmatprep.mubr.msk.f32.mxu1 %vm889_vm0, %v888_v0 }
  0x33   :  { %793 = vmatpush3.msra.mxu1 %v77_v5 }
  0x34   :  { %795 = vmatmul.mubr.f32.vlgmr.msra.gmra.mxu1 %v112_v7 }
  0xe7   :  { %v118_v20 = vpop.f32.mrf.mxu0 }
  0xe8   :  { %v199_v22 = vpop.f32.mrf.mxu1 }
  0xe9   :  { %v761_v21 = vpop.f32.mrf.mxu0  ;;  %v200_v23 = vadd.f32 %v199_v22, %v118_v20 }
  0xea   :  { %v768_v24 = vpop.f32.mrf.mxu1 }
  0xeb   :  { %v275_v25 = vpop.f32.mrf.mxu0 }
  0xec   :  { %v276_v26 = vadd.f32 %v275_v25, %v200_v23 }
  0xed   :  { %v775_v27 = vpop.f32.mrf.mxu0 }
  0xee   :  { %v350_v28 = vpop.f32.mrf.mxu1 }
  0xef   :  { %v351_v29 = vadd.f32 %v350_v28, %v276_v26 }
  0xf0   :  { %v782_v30 = vpop.f32.mrf.mxu1 }
  0xf1   :  { %v427_v31 = vpop.f32.mrf.mxu0 }
  0xf2   :  { %v428_v32 = vadd.f32 %v427_v31, %v351_v29 }
  0xf3   :  { %v789_v33 = vpop.f32.mrf.mxu0 }
  0xf4   :  { %v500_v34 = vpop.f32.mrf.mxu1 }
  0xf5   :  { %v924_v35 = vadd.f32 %v500_v34, %v428_v32 }
  0xf6   :  { %v796_v36 = vpop.f32.mrf.mxu1 }
  0xf7   :  { %v507_v37 = vand.u32 2139095040, %v924_v35  ;;  %v504_v41 = vand.u32 2147483647, %v924_v35  ;;  %vm506_vm9 = vcmp.lt.s32.totalorder %v924_v35, 0  ;;  %vm596_vm1 = vweird.f32 %v924_v35 }
  0xf9   :  { %v508_v38 = vshrl.u32 %v507_v37, 23  ;;  %v511_v44 = vand.u32 8388607, %v504_v41  ;;  %vm505_vm10 = vcmp.le.f32.partialorder %v504_v41, 0.7853982 }
  0xfb   :  { %v729_v39 = vadd.s32 4294967169, %v508_v38  ;;  %v512_v63 = vor.u32 8388608, %v511_v44 }
  0xfd   :  { %v514_v40 = vadd.s32 1, %v729_v39  ;;  %v552_v13 = vshll.u32 %v512_v63, 8 }
  0xff   :  { %vm515_vm2 = vcmp.gt.s32.totalorder %v514_v40, 0 }
 0x100   :  { %v516_v42 = vsel %vm515_vm2, %v514_v40, 0 }
 0x101   :  { %v518_v43 = vand.u32 31, %v516_v42  ;;  %v517_v46 = vshrl.u32 %v516_v42, 5 }
 0x103   :  { %v519_v45 = vsub.s32 32, %v518_v43  ;;  %v521_v48 = vshll.u32 %v890_v47, %v518_v43  ;;  %v524_v50 = vshll.u32 %v891_v49, %v518_v43  ;;  %v527_v54 = vshll.u32 %v892_v52, %v518_v43 }
 0x104   :  { %v530_v57 = vshll.u32 %v893_v55, %v518_v43  ;;  %v533_v60 = vshll.u32 %v894_v58, %v518_v43  ;;  %vm536_vm3 = vcmp.lt.s32.totalorder %v517_v46, 1  ;;  %vm539_vm4 = vcmp.lt.s32.totalorder %v517_v46, 4 }
 0x105   :  { %v522_v51 = vshrl.u32 %v891_v49, %v519_v45  ;;  %v525_v53 = vshrl.u32 %v892_v52, %v519_v45  ;;  %v528_v56 = vshrl.u32 %v893_v55, %v519_v45  ;;  %v531_v59 = vshrl.u32 %v894_v58, %v519_v45 }
 0x106   :  { %v534_v62 = vshrl.u32 %v895_v61, %v519_v45  ;;  %v520_v8 = vshrl.u32 %v890_v47, %v519_v45  ;;  %vm538_vm5 = vcmp.lt.s32.totalorder %v517_v46, 3  ;;  %vm537_vm6 = vcmp.lt.s32.totalorder %v517_v46, 2 }
 0x107   :  { %v523_v0 = vor.u32 %v522_v51, %v521_v48  ;;  %v526_v1 = vor.u32 %v525_v53, %v524_v50  ;;  %v529_v2 = vor.u32 %v528_v56, %v527_v54  ;;  %v532_v3 = vor.u32 %v531_v59, %v530_v57 }
 0x108   :  { %v535_v4 = vor.u32 %v534_v62, %v533_v60 }
 0x109   :  { %v541_v5 = vsel %vm539_vm4, %v529_v2, 2102212464  ;;  %v544_v6 = vsel %vm536_vm3, %v523_v0, %v526_v1  ;;  %v548_v7 = vsel %vm536_vm3, %v526_v1, %v529_v2  ;;  %v545_v9 = vsel %vm539_vm4, %v532_v3, 920167782 }
 0x10a   :  { %v549_v10 = vsel %vm539_vm4, %v535_v4, 1326507024  ;;  %v546_v11 = vsel %vm538_vm5, %v529_v2, %v545_v9  ;;  %v540_v14 = vsel %vm536_vm3, %v520_v8, %v523_v0  ;;  %v542_v15 = vsel %vm538_vm5, %v526_v1, %v541_v5 }
 0x10b   :  { %v550_v12 = vsel %vm538_vm5, %v532_v3, %v549_v10  ;;  %v547_v16 = vsel %vm537_vm6, %v544_v6, %v546_v11  ;;  %v543_v22 = vsel %vm537_vm6, %v540_v14, %v542_v15 }
 0x10c   :  { %v551_v17 = vsel %vm537_vm6, %v548_v7, %v550_v12  ;;  %v933_v20 = vmul.u32.u64.low %v552_v13, %v547_v16  ;;  %v934_v21 = vmul.u32.u64.high %v552_v13, %v547_v16, %v933_v20  ;;  %v559_v24 = vmul.u32 %v552_v13, %v543_v22 }
 0x10d   :  { %v930_v18 = vmul.u32.u64.low %v552_v13, %v551_v17  ;;  %v931_v19 = vmul.u32.u64.high %v552_v13, %v551_v17, %v930_v18 }
 0x10e   :  { %v562_v23 = vadd.s32 1, %v934_v21 }
 0x10f   :  { %vm561_vm7 = vc.u32 %v931_v19, %v933_v20  ;;  %v560_v37 = vadd.s32 %v933_v20, %v931_v19 }
 0x110   :  { %v563_v25 = vsel %vm561_vm7, %v562_v23, %v934_v21 }
 0x111   :  { %v564_v26 = vadd.s32 %v563_v25, %v559_v24 }
 0x113   :  { %v565_v27 = vadd.s32 536870912, %v564_v26 }
 0x115   :  { %v566_v28 = vshrl.u32 %v565_v27, 30 }
 0x117   :  { %v567_v29 = vshll.u32 %v566_v28, 30  ;;  %v590_v51 = vsub.s32 4, %v566_v28 }
 0x119   :  { %v568_v30 = vsub.s32 %v564_v26, %v567_v29  ;;  %v591_v54 = vsel %vm506_vm9, %v590_v51, %v566_v28 }
 0x11a   :  { %v593_v55 = vsel %vm505_vm10, 0, %v591_v54 }
 0x11b   :  { %v570_v31 = vsub.s32 0, %v568_v30  ;;  %v701_v56 = vadd.s32 3, %v593_v55  ;;  %v597_v57 = vand.u32 3, %v593_v55 }
 0x11d   :  { %v730_v32 = vmin.u32 %v570_v31, %v568_v30  ;;  %v702_v58 = vand.u32 3, %v701_v56  ;;  %vm602_vm11 = vcmp.eq.s32.totalorder %v597_v57, 2  ;;  %vm599_vm13 = vcmp.eq.s32.totalorder %v597_v57, 0 }
 0x11e   :  { %vm598_vm15 = vcmp.lt.s32.totalorder %v597_v57, 2 }
 0x11f   :  { %v572_v33 = vclz %v730_v32  ;;  %vm707_vm12 = vcmp.eq.s32.totalorder %v702_v58, 2  ;;  %vm704_vm14 = vcmp.eq.s32.totalorder %v702_v58, 0  ;;  %vm703_vm0 = vcmp.lt.s32.totalorder %v702_v58, 2 }
 0x121   :  { %v731_v34 = vadd.s32 4294967294, %v572_v33 }
 0x123   :  { %vm732_vm8 = vcmp.lt.s32.totalorder %v731_v34, 0 }
 0x124   :  { %v575_v36 = vsel %vm732_vm8, 0, %v731_v34 }
 0x125   :  { %v576_v38 = vsub.s32 32, %v575_v36  ;;  %v580_v39 = vsub.s32 4294967266, %v575_v36  ;;  %v577_v40 = vshll.u32 %v568_v30, %v575_v36 }
 0x127   :  { %v578_v42 = vshrl.u32 %v560_v37, %v576_v38  ;;  %v581_v43 = vadd.s32 127, %v580_v39 }
 0x129   :  { %v579_v44 = vor.u32 %v578_v42, %v577_v40  ;;  %v582_v45 = vshll.u32 %v581_v43, 23 }
 0x12b   :  { %v583_v46 = vor.u32 4788187, %v582_v45  ;;  %v586_v48 = vcvt.s32.f32 %v579_v44 }
 0x12d   :  { %v584_v47 = vand.u32 2147483647, %v583_v46 }
 0x12f   :  { %v587_v49 = vmul.f32 %v586_v48, %v584_v47 }
 0x131   :  { %v588_v50 = vxor.u32 2147483648, %v587_v49 }
 0x133   :  { %v589_v52 = vsel %vm506_vm9, %v588_v50, %v587_v49 }
 0x134   :  { %v592_v53 = vsel %vm505_vm10, %v924_v35, %v589_v52 }
 0x135   :  { %814 = vcosq.f32 %v592_v53 }
 0x136   :  { %816 = vsinq.f32 %v592_v53 }
 0x142   :  { %v815_v59 = vpop.eup %814 }
 0x143   :  { %v817_v60 = vpop.eup %816  ;;  %v603_v61 = vxor.u32 2147483648, %v815_v59 }
 0x144   :  { %v600_v62 = vxor.u32 2147483648, %v817_v60 }
 0x145   :  { %v604_v41 = vsel %vm602_vm11, %v603_v61, %v817_v60  ;;  %v709_v63 = vsel %vm707_vm12, %v603_v61, %v817_v60 }
 0x146   :  { %v601_v0 = vsel %vm599_vm13, %v815_v59, %v600_v62  ;;  %v706_v1 = vsel %vm704_vm14, %v815_v59, %v600_v62 }
 0x147   :  { %v605_v2 = vsel %vm598_vm15, %v601_v0, %v604_v41  ;;  %v710_v3 = vsel %vm703_vm0, %v706_v1, %v709_v63 }
 0x148   :  { %v606_v4 = vsel %vm596_vm1, nan, %v605_v2  ;;  %v711_v5 = vsel %vm596_vm1, nan, %v710_v3 }
 0x149   :  { %607 = vst [vmem:[#allocation7] sm:$0xff] %v606_v4  ;;  %712 = vst [vmem:[#allocation7 + $0x8] sm:$0xff] %v711_v5 }
 0x14a   :  { %869 = shalt.err (!%p866_p0)
}
 0x14b   :  { %722 = dma.vmem_to_hbm [thread:$0]  %s720_s1, 256, %s950_s2, [#allocation4]  }
 0x14c   :  { %882 = dma.done.wait [#allocation4], 256  }
 0x14d   :  { %883 = vsyncadd [#allocation4], 4294967040 }
 0x14e   :  { %726 = vsyncpa [#allocation3], 1 }
 0x14f   :  { %727 = vsyncpa [#allocation6], 1 }
 0x150   :  { %728 = vsyncpa [#allocation4], 1 }

</bundles_post_ra>
